<compile_context>
chip_gen: v5e
topology: v5e:2x2
jax: 0.10.0
libtpu: 0.0.40
codegen_flags: <defaults>
</compile_context>

<pallas_src>
import functools
import math

import jax
import jax.numpy as jnp
import numpy as np
from jax.experimental import pallas as pl
from jax.experimental.pallas import tpu as pltpu


# --------------------------------------------------------------------------------------
# Kernel
# --------------------------------------------------------------------------------------
def _encoder_layer_kernel(x_ref, qid_ref, kid_ref,
                          g_ref, beta_ref,
                          wqkv_ref, bqkv_ref, wo_ref, bo_ref,
                          w1_ref, b1_ref, w2_ref, b2_ref,
                          o_ref, attn_ref, *, approx_recip=True):
    f32 = jnp.float32
    cdt = wqkv_ref.dtype                       # MXU operand dtype (bf16 or f32)
    H = wqkv_ref.shape[0]
    Dh = wqkv_ref.shape[2] // 3

    x = x_ref[...]                             # (T, D) f32, fused (batch_tile*seq) rows

    # ---- pre-norm LayerNorm (f32 reductions, eps=1e-5, affine) ----
    mu = jnp.mean(x, axis=-1, keepdims=True)
    xc = x - mu
    var = jnp.mean(xc * xc, axis=-1, keepdims=True)
    xn = (xc * jax.lax.rsqrt(var + 1e-5) * g_ref[...] + beta_ref[...]).astype(cdt)

    # ---- additive attention bias built in-kernel from two tiny id vectors ----
    # qid[r] = fused-batch block of query row r (shape (T, 1));
    # kid[c] = block of key col c, with padded keys remapped to -1 (shape (1, T)).
    # A single compare therefore carries both the key-padding mask and the
    # block-diagonal term that keeps fused batch elements from attending to each other.
    bias = jnp.where(qid_ref[0] == kid_ref[0],
                     jnp.float32(0.0), jnp.float32(-1e18))          # (T, T) f32

    # ---- attention: loop over heads so only one head's (T, T) scores are live ----
    attn_ref[...] = jnp.zeros_like(attn_ref)

    def head_body(h, carry):
        # fused per-head QKV projection: K = D, N = 3*Dh (1/sqrt(Dh) folded into Wq/bq).
        qkv = jnp.dot(xn, wqkv_ref[h], preferred_element_type=f32) + bqkv_ref[h]
        q = qkv[:, :Dh].astype(cdt)
        k = qkv[:, Dh:2 * Dh].astype(cdt)
        v = qkv[:, 2 * Dh:].astype(cdt)

        # q @ k^T (NT form, f32 accumulation) + mask bias
        s = jax.lax.dot_general(q, k, (((1,), (1,)), ((), ())),
                                preferred_element_type=f32) + bias   # (T, T)
        m = jnp.max(s, axis=-1, keepdims=True)
        e = jnp.exp(s - m)
        denom = jnp.sum(e, axis=-1, keepdims=True)
        if approx_recip:
            p = e * pl.reciprocal(denom, approx=True)                # EUP, ~1e-3 rel err
        else:
            p = e / denom                                            # exact (validation)
        # attention dropout (p=0.0 / eval mode) is the identity here.
        ctx = jnp.dot(p.astype(cdt), v, preferred_element_type=f32)  # (T, Dh)

        # output projection accumulated in place: no (H, T, D) intermediate, no axis-0 sum
        attn_ref[...] += jnp.dot(ctx.astype(cdt), wo_ref[h],
                                 preferred_element_type=f32)
        return carry

    jax.lax.fori_loop(0, H, head_body, 0)
    # TODO(synk): process 2+ heads per step (or pad Dh to 128) so the q@k^T / p@v
    #             contractions better fill the 256-wide v6e/v7x MXU.

    # ---- residual (layer dropout p=0.0 -> identity) + FFN ----
    res = attn_ref[...] + bo_ref[...] + x
    h1 = jnp.maximum(
        jnp.dot(res.astype(cdt), w1_ref[...], preferred_element_type=f32) + b1_ref[...],
        0.0)
    out = jnp.dot(h1.astype(cdt), w2_ref[...], preferred_element_type=f32) + b2_ref[...]
    o_ref[...] = out.astype(o_ref.dtype)


# --------------------------------------------------------------------------------------
# Wrapper helpers
# --------------------------------------------------------------------------------------
def _pick_batch_tile(B, S):
    """How many batch elements to fuse per grid step.

    Prefer >= 256 fused rows for MXU efficiency, but keep >= 2 grid steps whenever
    possible so the ("parallel",) grid axis can shard across TensorCores (v7x has 2).
    """
    divisors = [d for d in range(1, B + 1) if B % d == 0]

    def ok(bt):  # row-block must satisfy the sublane tiling rule (multiple of 8 or full)
        return (bt * S) % 8 == 0 or bt == B

    for bt in divisors:
        if ok(bt) and bt * S >= 256 and B // bt >= 2:
            return bt
    cands = [d for d in divisors if ok(d) and B // d >= 2]
    if cands:
        return max(cands)
    return B


_SINGLE_BUFFER_OK = None


def _probe_kernel(x_ref, o_ref):
    o_ref[...] = x_ref[...] + 1.0


def _single_buffer_weights_supported():
    """Detect whether this JAX build honors pipeline_mode=pl.Buffered(1) on pallas_call."""
    global _SINGLE_BUFFER_OK
    if _SINGLE_BUFFER_OK is not None:
        return _SINGLE_BUFFER_OK
    ok = False
    if hasattr(pl, "Buffered"):
        try:
            spec = pl.BlockSpec((8, 128), lambda i: (0, 0),
                                pipeline_mode=pl.Buffered(1))
            fn = pl.pallas_call(
                _probe_kernel,
                out_shape=jax.ShapeDtypeStruct((8, 128), jnp.float32),
                grid=(2,),
                in_specs=[spec],
                out_specs=pl.BlockSpec((8, 128), lambda i: (0, 0)))
            jax.block_until_ready(fn(jnp.zeros((8, 128), jnp.float32)))
            ok = True
        except Exception:
            ok = False
    _SINGLE_BUFFER_OK = ok
    return ok


def _vmem_capacity_bytes(default=64 << 20):
    try:
        info = pltpu.get_tpu_info()
        cap = getattr(info, "vmem_capacity_bytes", None)
        if cap:
            return int(cap)
    except Exception:
        pass
    return default


# --------------------------------------------------------------------------------------
# Public wrapper
# --------------------------------------------------------------------------------------
def transformer_encoder_layer(x, mask, params, *, n_heads,
                              compute_dtype=jnp.bfloat16,
                              approx_softmax_recip=True,
                              single_buffer_weights=None):
    """x: (B, S, D) f32; mask: (B, S) with 1 = attend, 0 = masked key."""
    B, S, D = x.shape
    assert D % n_heads == 0
    H = n_heads
    Dh = D // H
    F = params["w1"].shape[1]

    bt = _pick_batch_tile(B, S)
    n_tiles = B // bt
    T = bt * S

    if single_buffer_weights is None:
        use_single_buffer = _single_buffer_weights_supported()
    else:
        use_single_buffer = bool(single_buffer_weights)

    # ---- inputs: flatten tokens so each grid step sees a (T, D) slab ----
    x2 = x.reshape(B * S, D).astype(jnp.float32)

    # ---- tiny per-tile id vectors (replace the old dense (n_tiles, T, T) HBM bias) ----
    blk = jnp.arange(bt, dtype=jnp.float32)
    blk = jnp.broadcast_to(blk[None, :, None], (n_tiles, bt, S))
    q_ids = blk.reshape(n_tiles, T, 1)                               # query-row block id
    keep = mask.astype(jnp.float32).reshape(n_tiles, bt, S)
    k_ids = jnp.where(keep != 0, blk, -1.0).reshape(n_tiles, 1, T)   # key block id / -1

    # ---- parameters: per-head fused QKV, scale folded in, bf16 (or f32) operands ----
    cdt = compute_dtype
    inv_scale = jnp.float32(1.0 / math.sqrt(Dh))

    gamma = params["ln_g"].reshape(1, D).astype(jnp.float32)
    beta = params["ln_b"].reshape(1, D).astype(jnp.float32)

    wq_h = (params["wq"] * inv_scale).reshape(D, H, Dh)
    wk_h = params["wk"].reshape(D, H, Dh)
    wv_h = params["wv"].reshape(D, H, Dh)
    wqkv = jnp.concatenate([wq_h, wk_h, wv_h], axis=-1)              # (D, H, 3*Dh)
    wqkv = wqkv.transpose(1, 0, 2).astype(cdt)                       # (H, D, 3*Dh)

    bq_h = (params["bq"] * inv_scale).reshape(H, Dh)
    bk_h = params["bk"].reshape(H, Dh)
    bv_h = params["bv"].reshape(H, Dh)
    bqkv = jnp.concatenate([bq_h, bk_h, bv_h], axis=-1)
    bqkv = bqkv.reshape(H, 1, 3 * Dh).astype(jnp.float32)

    wo3 = params["wo"].reshape(H, Dh, D).astype(cdt)
    bo = params["bo"].reshape(1, D).astype(jnp.float32)
    w1 = params["w1"].astype(cdt)
    b1 = params["b1"].reshape(1, F).astype(jnp.float32)
    w2 = params["w2"].astype(cdt)
    b2 = params["b2"].reshape(1, D).astype(jnp.float32)

    param_arrays = [gamma, beta, wqkv, bqkv, wo3, bo, w1, b1, w2, b2]

    def const_spec(a):
        zeros = (0,) * a.ndim
        idx = lambda i, z=zeros: z
        if use_single_buffer:
            # constant block -> one buffer is enough; halves resident weight VMEM (v7x)
            return pl.BlockSpec(a.shape, idx, pipeline_mode=pl.Buffered(1))
        return pl.BlockSpec(a.shape, idx)

    # ---- advisory cost estimate + explicit VMEM budget ----
    itemsz = jnp.dtype(cdt).itemsize
    flops_tile = 8 * T * D * D + 4 * T * T * D + 4 * T * D * F
    weight_bytes = (4 * D * D + 2 * D * F) * itemsz + (7 * D + F) * 4
    cost = pl.CostEstimate(
        flops=int(n_tiles * flops_tile),
        transcendentals=int(n_tiles * H * T * T),
        bytes_accessed=int(2 * B * S * D * 4 + 2 * B * S * 4 + weight_bytes))

    wbuf = 1 if use_single_buffer else 2
    act_io = 2 * 2 * T * D * 4                          # x + out blocks, double-buffered
    head_live = 2 * T * T * 4 + 3 * T * Dh * (4 + itemsz)
    resident = T * D * (itemsz + 8) + T * T * 4 + T * F * (4 + itemsz)
    vmem_est = wbuf * weight_bytes + act_io + head_live + resident + (4 << 20)
    vmem_cap = _vmem_capacity_bytes()
    vmem_limit = int(min(max(vmem_est, 32 << 20), int(vmem_cap * 0.85)))

    kernel = functools.partial(_encoder_layer_kernel,
                               approx_recip=approx_softmax_recip)

    out2 = pl.pallas_call(
        kernel,
        out_shape=jax.ShapeDtypeStruct((B * S, D), jnp.float32),
        grid=(n_tiles,),
        in_specs=[
            pl.BlockSpec((T, D), lambda i: (i, 0)),          # x slab (bt*S tokens)
            pl.BlockSpec((1, T, 1), lambda i: (i, 0, 0)),    # query-row block ids
            pl.BlockSpec((1, 1, T), lambda i: (i, 0, 0)),    # key block ids (pad -> -1)
        ] + [const_spec(a) for a in param_arrays],
        out_specs=pl.BlockSpec((T, D), lambda i: (i, 0)),
        scratch_shapes=[pltpu.VMEM((T, D), jnp.float32)],    # output-proj accumulator
        compiler_params=pltpu.CompilerParams(
            dimension_semantics=("parallel",),
            vmem_limit_bytes=vmem_limit),
        cost_estimate=cost,
    )(x2, q_ids, k_ids, *param_arrays)

    return out2.reshape(B, S, D)


# --------------------------------------------------------------------------------------
# Pure-JAX reference (mirrors the PyTorch forward in eval mode) and parameter init
# --------------------------------------------------------------------------------------
def _reference(x, mask, params, *, n_heads):
    B, S, D = x.shape
    dh = D // n_heads
    mu = x.mean(-1, keepdims=True)
    var = ((x - mu) ** 2).mean(-1, keepdims=True)
    xn = (x - mu) / jnp.sqrt(var + 1e-5) * params["ln_g"] + params["ln_b"]

    def proj(t, w, b):
        return t @ w + b

    q = proj(xn, params["wq"], params["bq"]).reshape(B, S, n_heads, dh)
    k = proj(xn, params["wk"], params["bk"]).reshape(B, S, n_heads, dh)
    v = proj(xn, params["wv"], params["bv"]).reshape(B, S, n_heads, dh)
    s = jnp.einsum("bqhd,bkhd->bhqk", q, k) / math.sqrt(dh)
    s = jnp.where(mask[:, None, None, :] == 0, -1e18, s)
    p = jax.nn.softmax(s, axis=-1)
    ctx = jnp.einsum("bhqk,bkhd->bqhd", p, v).reshape(B, S, D)
    attn = proj(ctx, params["wo"], params["bo"])
    res = attn + x
    h1 = jax.nn.relu(proj(res, params["w1"], params["b1"]))
    return proj(h1, params["w2"], params["b2"])


def _init_params(key, D, F):
    ks = jax.random.split(key, 12)

    def lin(kw, kb, fan_in, fan_out):
        bound = 1.0 / math.sqrt(fan_in)
        w = jax.random.uniform(kw, (fan_in, fan_out), jnp.float32, -bound, bound)
        b = jax.random.uniform(kb, (fan_out,), jnp.float32, -bound, bound)
        return w, b

    wq, bq = lin(ks[0], ks[1], D, D)
    wk, bk = lin(ks[2], ks[3], D, D)
    wv, bv = lin(ks[4], ks[5], D, D)
    wo, bo = lin(ks[6], ks[7], D, D)
    w1, b1 = lin(ks[8], ks[9], D, F)
    w2, b2 = lin(ks[10], ks[11], F, D)
    return dict(ln_g=jnp.ones((D,), jnp.float32), ln_b=jnp.zeros((D,), jnp.float32),
                wq=wq, bq=bq, wk=wk, bk=bk, wv=wv, bv=bv, wo=wo, bo=bo,
                w1=w1, b1=b1, w2=w2, b2=b2)


if __name__ == "__main__":
    B, S, D, H, F = 2, 8, 32, 4, 64   # batch, seq, embedding_size, num_heads, ffn_size

    key = jax.random.PRNGKey(0)
    k_x, k_p = jax.random.split(key)
    x = jax.random.normal(k_x, (B, S, D), dtype=jnp.float32)
    mask = jnp.array([[1, 1, 1, 1, 1, 1, 1, 1],
                      [1, 1, 1, 1, 1, 0, 0, 0]], dtype=jnp.float32)
    params = _init_params(k_p, D, F)

    ref = _reference(x, mask, params, n_heads=H)

    # f32 operands + exact softmax divide: tight structural check against the reference.
    f32_fn = jax.jit(functools.partial(transformer_encoder_layer, n_heads=H,
                                       compute_dtype=jnp.float32,
                                       approx_softmax_recip=False))
    out_f32 = jax.block_until_ready(f32_fn(x, mask, params))
    np.testing.assert_allclose(np.asarray(out_f32), np.asarray(ref),
                               rtol=1e-2, atol=1e-2)

    # bf16 MXU operands (f32 accumulation / reductions) + approx reciprocal: fast path.
    bf16_fn = jax.jit(functools.partial(transformer_encoder_layer, n_heads=H,
                                        compute_dtype=jnp.bfloat16,
                                        approx_softmax_recip=True))
    out_bf16 = jax.block_until_ready(bf16_fn(x, mask, params))
    np.testing.assert_allclose(np.asarray(out_bf16), np.asarray(ref),
                               rtol=5e-2, atol=5e-2)

    print("KERNEL_OK")
</pallas_src>

<mosaic_0001>
module attributes {stable_mosaic.version = 11 : i64} {
  func.func @_encoder_layer_kernel(%arg0: i32, %arg1: memref<8x32xf32, #tpu.memory_space<vmem>>, %arg2: memref<1x8x1xf32, #tpu.memory_space<vmem>>, %arg3: memref<1x1x8xf32, #tpu.memory_space<vmem>>, %arg4: memref<1x32xf32, #tpu.memory_space<vmem>>, %arg5: memref<1x32xf32, #tpu.memory_space<vmem>>, %arg6: memref<4x32x24xf32, #tpu.memory_space<vmem>>, %arg7: memref<4x1x24xf32, #tpu.memory_space<vmem>>, %arg8: memref<4x8x32xf32, #tpu.memory_space<vmem>>, %arg9: memref<1x32xf32, #tpu.memory_space<vmem>>, %arg10: memref<32x64xf32, #tpu.memory_space<vmem>>, %arg11: memref<1x64xf32, #tpu.memory_space<vmem>>, %arg12: memref<64x32xf32, #tpu.memory_space<vmem>>, %arg13: memref<1x32xf32, #tpu.memory_space<vmem>>, %arg14: memref<8x32xf32, #tpu.memory_space<vmem>>, %arg15: memref<8x32xf32, #tpu.memory_space<vmem>>) attributes {dimension_semantics = [#tpu.dimension_semantics<parallel>], iteration_bounds = array<i64: 2>, scalar_prefetch = 0 : i64, scratch_operands = 1 : i64, tpu.core_type = #tpu.core_type<tc>, window_params = [{transform_indices = @transform_0, window_bounds = array<i64: 8, 32>}, {transform_indices = @transform_1, window_bounds = array<i64: 1, 8, 1>}, {transform_indices = @transform_2, window_bounds = array<i64: 1, 1, 8>}, {pipeline_mode = #tpu.pipeline_mode<synchronous>, transform_indices = @transform_3, window_bounds = array<i64: 1, 32>}, {pipeline_mode = #tpu.pipeline_mode<synchronous>, transform_indices = @transform_4, window_bounds = array<i64: 1, 32>}, {pipeline_mode = #tpu.pipeline_mode<synchronous>, transform_indices = @transform_5, window_bounds = array<i64: 4, 32, 24>}, {pipeline_mode = #tpu.pipeline_mode<synchronous>, transform_indices = @transform_6, window_bounds = array<i64: 4, 1, 24>}, {pipeline_mode = #tpu.pipeline_mode<synchronous>, transform_indices = @transform_7, window_bounds = array<i64: 4, 8, 32>}, {pipeline_mode = #tpu.pipeline_mode<synchronous>, transform_indices = @transform_8, window_bounds = array<i64: 1, 32>}, {pipeline_mode = #tpu.pipeline_mode<synchronous>, transform_indices = @transform_9, window_bounds = array<i64: 32, 64>}, {pipeline_mode = #tpu.pipeline_mode<synchronous>, transform_indices = @transform_10, window_bounds = array<i64: 1, 64>}, {pipeline_mode = #tpu.pipeline_mode<synchronous>, transform_indices = @transform_11, window_bounds = array<i64: 64, 32>}, {pipeline_mode = #tpu.pipeline_mode<synchronous>, transform_indices = @transform_12, window_bounds = array<i64: 1, 32>}, {transform_indices = @transform_13, window_bounds = array<i64: 8, 32>}]} {
    %c0 = arith.constant 0 : index
    %c0_0 = arith.constant 0 : index
    %0 = vector.load %arg1[%c0, %c0_0] : memref<8x32xf32, #tpu.memory_space<vmem>>, vector<8x32xf32>
    %cst = arith.constant dense<0.000000e+00> : vector<8xf32>
    %1 = vector.multi_reduction <add>, %0, %cst [1] : vector<8x32xf32> to vector<8xf32>
    %2 = vector.shape_cast %1 : vector<8xf32> to vector<8x1xf32>
    %cst_1 = arith.constant 3.200000e+01 : f32
    %3 = vector.broadcast %cst_1 : f32 to vector<8x1xf32>
    %4 = arith.divf %2, %3 : vector<8x1xf32>
    %5 = vector.broadcast %4 : vector<8x1xf32> to vector<8x32xf32>
    %6 = arith.subf %0, %5 : vector<8x32xf32>
    %7 = arith.mulf %6, %6 : vector<8x32xf32>
    %cst_2 = arith.constant dense<0.000000e+00> : vector<8xf32>
    %8 = vector.multi_reduction <add>, %7, %cst_2 [1] : vector<8x32xf32> to vector<8xf32>
    %9 = vector.shape_cast %8 : vector<8xf32> to vector<8x1xf32>
    %cst_3 = arith.constant 3.200000e+01 : f32
    %10 = vector.broadcast %cst_3 : f32 to vector<8x1xf32>
    %11 = arith.divf %9, %10 : vector<8x1xf32>
    %cst_4 = arith.constant 9.99999974E-6 : f32
    %12 = vector.broadcast %cst_4 : f32 to vector<8x1xf32>
    %13 = arith.addf %11, %12 : vector<8x1xf32>
    %14 = math.rsqrt %13 : vector<8x1xf32>
    %15 = vector.broadcast %14 : vector<8x1xf32> to vector<8x32xf32>
    %16 = arith.mulf %6, %15 : vector<8x32xf32>
    %c0_5 = arith.constant 0 : index
    %c0_6 = arith.constant 0 : index
    %17 = vector.load %arg4[%c0_5, %c0_6] : memref<1x32xf32, #tpu.memory_space<vmem>>, vector<1x32xf32>
    %18 = vector.broadcast %17 : vector<1x32xf32> to vector<8x32xf32>
    %19 = arith.mulf %16, %18 : vector<8x32xf32>
    %c0_7 = arith.constant 0 : index
    %c0_8 = arith.constant 0 : index
    %20 = vector.load %arg5[%c0_7, %c0_8] : memref<1x32xf32, #tpu.memory_space<vmem>>, vector<1x32xf32>
    %21 = vector.broadcast %20 : vector<1x32xf32> to vector<8x32xf32>
    %22 = arith.addf %19, %21 : vector<8x32xf32>
    %c0_9 = arith.constant 0 : index
    %c0_10 = arith.constant 0 : index
    %c0_11 = arith.constant 0 : index
    %23 = vector.load %arg2[%c0_9, %c0_10, %c0_11] : memref<1x8x1xf32, #tpu.memory_space<vmem>>, vector<1x8x1xf32>
    %24 = vector.shape_cast %23 : vector<1x8x1xf32> to vector<8x1xf32>
    %c0_12 = arith.constant 0 : index
    %c0_13 = arith.constant 0 : index
    %c0_14 = arith.constant 0 : index
    %25 = vector.load %arg3[%c0_12, %c0_13, %c0_14] : memref<1x1x8xf32, #tpu.memory_space<vmem>>, vector<1x1x8xf32>
    %26 = vector.shape_cast %25 : vector<1x1x8xf32> to vector<1x8xf32>
    %27 = vector.broadcast %24 : vector<8x1xf32> to vector<8x8xf32>
    %28 = vector.broadcast %26 : vector<1x8xf32> to vector<8x8xf32>
    %29 = arith.cmpf oeq, %27, %28 : vector<8x8xf32>
    %cst_15 = arith.constant 0.000000e+00 : f32
    %cst_16 = arith.constant -9.99999984E+17 : f32
    %30 = vector.broadcast %cst_15 : f32 to vector<8x8xf32>
    %31 = vector.broadcast %cst_16 : f32 to vector<8x8xf32>
    %32 = arith.select %29, %30, %31 : vector<8x8xi1>, vector<8x8xf32>
    %cst_17 = arith.constant 0.000000e+00 : f32
    %33 = vector.broadcast %cst_17 : f32 to vector<8x32xf32>
    %c0_18 = arith.constant 0 : index
    %c0_19 = arith.constant 0 : index
    %34 = vector.load %arg15[%c0_18, %c0_19] : memref<8x32xf32, #tpu.memory_space<vmem>>, vector<8x32xf32>
    tpu.vector_store %arg15[%c0_18, %c0_19], %33 {strides = array<i32>} : memref<8x32xf32, #tpu.memory_space<vmem>>, vector<8x32xf32>,
    %c0_i32 = arith.constant 0 : i32
    %c4_i32 = arith.constant 4 : i32
    %35 = arith.addi %c0_i32, %c4_i32 : i32
    %c1_i32 = arith.constant 1 : i32
    scf.for %arg16 = %c0_i32 to %35 step %c1_i32  : i32 {
      %54 = arith.index_cast %arg16 : i32 to index
      %c0_38 = arith.constant 0 : index
      %c0_39 = arith.constant 0 : index
      %55 = vector.load %arg6[%54, %c0_38, %c0_39] : memref<4x32x24xf32, #tpu.memory_space<vmem>>, vector<1x32x24xf32>
      %56 = vector.shape_cast %55 : vector<1x32x24xf32> to vector<32x24xf32>
      %cst_40 = arith.constant dense<0.000000e+00> : vector<8x24xf32>
      %57 = tpu.matmul %22, %56, %cst_40 {dimension_numbers = #tpu.dot_dimension_numbers<[1], [0], [0], [1], [0, 0, 1, 1], [], []>} : vector<8x32xf32>, vector<32x24xf32>, vector<8x24xf32> -> vector<8x24xf32>
      %58 = arith.index_cast %arg16 : i32 to index
      %c0_41 = arith.constant 0 : index
      %c0_42 = arith.constant 0 : index
      %59 = vector.load %arg7[%58, %c0_41, %c0_42] : memref<4x1x24xf32, #tpu.memory_space<vmem>>, vector<1x1x24xf32>
      %60 = vector.shape_cast %59 : vector<1x1x24xf32> to vector<1x24xf32>
      %61 = vector.broadcast %60 : vector<1x24xf32> to vector<8x24xf32>
      %62 = arith.addf %57, %61 : vector<8x24xf32>
      %63 = vector.extract_strided_slice %62 {offsets = [0, 0], sizes = [8, 8], strides = [1, 1]} : vector<8x24xf32> to vector<8x8xf32>
      %64 = vector.extract_strided_slice %62 {offsets = [0, 8], sizes = [8, 8], strides = [1, 1]} : vector<8x24xf32> to vector<8x8xf32>
      %65 = vector.extract_strided_slice %62 {offsets = [0, 16], sizes = [8, 8], strides = [1, 1]} : vector<8x24xf32> to vector<8x8xf32>
      %cst_43 = arith.constant dense<0.000000e+00> : vector<8x8xf32>
      %66 = tpu.matmul %63, %64, %cst_43 {dimension_numbers = #tpu.dot_dimension_numbers<[1], [1], [0], [0], [0, 0, 1, 0], [], []>} : vector<8x8xf32>, vector<8x8xf32>, vector<8x8xf32> -> vector<8x8xf32>
      %67 = arith.addf %66, %32 : vector<8x8xf32>
      %cst_44 = arith.constant dense<0xFF800000> : vector<8xf32>
      %68 = vector.multi_reduction <maximumf>, %67, %cst_44 [1] : vector<8x8xf32> to vector<8xf32>
      %69 = vector.shape_cast %68 : vector<8xf32> to vector<8x1xf32>
      %70 = vector.broadcast %69 : vector<8x1xf32> to vector<8x8xf32>
      %71 = arith.subf %67, %70 : vector<8x8xf32>
      %72 = math.exp %71 : vector<8x8xf32>
      %cst_45 = arith.constant dense<0.000000e+00> : vector<8xf32>
      %73 = vector.multi_reduction <add>, %72, %cst_45 [1] : vector<8x8xf32> to vector<8xf32>
      %74 = vector.shape_cast %73 : vector<8xf32> to vector<8x1xf32>
      %75 = vector.broadcast %74 : vector<8x1xf32> to vector<8x8xf32>
      %76 = arith.divf %72, %75 : vector<8x8xf32>
      %cst_46 = arith.constant dense<0.000000e+00> : vector<8x8xf32>
      %77 = tpu.matmul %76, %65, %cst_46 {dimension_numbers = #tpu.dot_dimension_numbers<[1], [0], [0], [1], [0, 0, 1, 1], [], []>} : vector<8x8xf32>, vector<8x8xf32>, vector<8x8xf32> -> vector<8x8xf32>
      %c0_47 = arith.constant 0 : index
      %c0_48 = arith.constant 0 : index
      %78 = vector.load %arg15[%c0_47, %c0_48] : memref<8x32xf32, #tpu.memory_space<vmem>>, vector<8x32xf32>
      %79 = arith.index_cast %arg16 : i32 to index
      %c0_49 = arith.constant 0 : index
      %c0_50 = arith.constant 0 : index
      %80 = vector.load %arg8[%79, %c0_49, %c0_50] : memref<4x8x32xf32, #tpu.memory_space<vmem>>, vector<1x8x32xf32>
      %81 = vector.shape_cast %80 : vector<1x8x32xf32> to vector<8x32xf32>
      %cst_51 = arith.constant dense<0.000000e+00> : vector<8x32xf32>
      %82 = tpu.matmul %77, %81, %cst_51 {dimension_numbers = #tpu.dot_dimension_numbers<[1], [0], [0], [1], [0, 0, 1, 1], [], []>} : vector<8x8xf32>, vector<8x32xf32>, vector<8x32xf32> -> vector<8x32xf32>
      %83 = arith.addf %78, %82 : vector<8x32xf32>
      %c0_52 = arith.constant 0 : index
      %c0_53 = arith.constant 0 : index
      %84 = vector.load %arg15[%c0_52, %c0_53] : memref<8x32xf32, #tpu.memory_space<vmem>>, vector<8x32xf32>
      tpu.vector_store %arg15[%c0_52, %c0_53], %83 {strides = array<i32>} : memref<8x32xf32, #tpu.memory_space<vmem>>, vector<8x32xf32>,
    }
    %c4_i32_20 = arith.constant 4 : i32
    %c0_21 = arith.constant 0 : index
    %c0_22 = arith.constant 0 : index
    %36 = vector.load %arg15[%c0_21, %c0_22] : memref<8x32xf32, #tpu.memory_space<vmem>>, vector<8x32xf32>
    %c0_23 = arith.constant 0 : index
    %c0_24 = arith.constant 0 : index
    %37 = vector.load %arg9[%c0_23, %c0_24] : memref<1x32xf32, #tpu.memory_space<vmem>>, vector<1x32xf32>
    %38 = vector.broadcast %37 : vector<1x32xf32> to vector<8x32xf32>
    %39 = arith.addf %36, %38 : vector<8x32xf32>
    %40 = arith.addf %39, %0 : vector<8x32xf32>
    %c0_25 = arith.constant 0 : index
    %c0_26 = arith.constant 0 : index
    %41 = vector.load %arg10[%c0_25, %c0_26] : memref<32x64xf32, #tpu.memory_space<vmem>>, vector<32x64xf32>
    %cst_27 = arith.constant dense<0.000000e+00> : vector<8x64xf32>
    %42 = tpu.matmul %40, %41, %cst_27 {dimension_numbers = #tpu.dot_dimension_numbers<[1], [0], [0], [1], [0, 0, 1, 1], [], []>} : vector<8x32xf32>, vector<32x64xf32>, vector<8x64xf32> -> vector<8x64xf32>
    %c0_28 = arith.constant 0 : index
    %c0_29 = arith.constant 0 : index
    %43 = vector.load %arg11[%c0_28, %c0_29] : memref<1x64xf32, #tpu.memory_space<vmem>>, vector<1x64xf32>
    %44 = vector.broadcast %43 : vector<1x64xf32> to vector<8x64xf32>
    %45 = arith.addf %42, %44 : vector<8x64xf32>
    %cst_30 = arith.constant 0.000000e+00 : f32
    %46 = vector.broadcast %cst_30 : f32 to vector<8x64xf32>
    %47 = arith.maximumf %45, %46 : vector<8x64xf32>
    %c0_31 = arith.constant 0 : index
    %c0_32 = arith.constant 0 : index
    %48 = vector.load %arg12[%c0_31, %c0_32] : memref<64x32xf32, #tpu.memory_space<vmem>>, vector<64x32xf32>
    %cst_33 = arith.constant dense<0.000000e+00> : vector<8x32xf32>
    %49 = tpu.matmul %47, %48, %cst_33 {dimension_numbers = #tpu.dot_dimension_numbers<[1], [0], [0], [1], [0, 0, 1, 1], [], []>} : vector<8x64xf32>, vector<64x32xf32>, vector<8x32xf32> -> vector<8x32xf32>
    %c0_34 = arith.constant 0 : index
    %c0_35 = arith.constant 0 : index
    %50 = vector.load %arg13[%c0_34, %c0_35] : memref<1x32xf32, #tpu.memory_space<vmem>>, vector<1x32xf32>
    %51 = vector.broadcast %50 : vector<1x32xf32> to vector<8x32xf32>
    %52 = arith.addf %49, %51 : vector<8x32xf32>
    %c0_36 = arith.constant 0 : index
    %c0_37 = arith.constant 0 : index
    %53 = vector.load %arg14[%c0_36, %c0_37] : memref<8x32xf32, #tpu.memory_space<vmem>>, vector<8x32xf32>
    tpu.vector_store %arg14[%c0_36, %c0_37], %52 {strides = array<i32>} : memref<8x32xf32, #tpu.memory_space<vmem>>, vector<8x32xf32>,
    return
  }
  func.func @transform_0(%arg0: i32) -> (i32, i32) {
    %c0_i32 = arith.constant 0 : i32
    %c0_i32_0 = arith.constant 0 : i32
    return %arg0, %c0_i32 : i32, i32
  }
  func.func @transform_1(%arg0: i32) -> (i32, i32, i32) {
    %c0_i32 = arith.constant 0 : i32
    %c0_i32_0 = arith.constant 0 : i32
    %c0_i32_1 = arith.constant 0 : i32
    return %arg0, %c0_i32, %c0_i32_0 : i32, i32, i32
  }
  func.func @transform_2(%arg0: i32) -> (i32, i32, i32) {
    %c0_i32 = arith.constant 0 : i32
    %c0_i32_0 = arith.constant 0 : i32
    %c0_i32_1 = arith.constant 0 : i32
    return %arg0, %c0_i32, %c0_i32_0 : i32, i32, i32
  }
  func.func @transform_3(%arg0: i32) -> (i32, i32) {
    %c0_i32 = arith.constant 0 : i32
    %c0_i32_0 = arith.constant 0 : i32
    %c0_i32_1 = arith.constant 0 : i32
    return %c0_i32, %c0_i32_0 : i32, i32
  }
  func.func @transform_4(%arg0: i32) -> (i32, i32) {
    %c0_i32 = arith.constant 0 : i32
    %c0_i32_0 = arith.constant 0 : i32
    %c0_i32_1 = arith.constant 0 : i32
    return %c0_i32, %c0_i32_0 : i32, i32
  }
  func.func @transform_5(%arg0: i32) -> (i32, i32, i32) {
    %c0_i32 = arith.constant 0 : i32
    %c0_i32_0 = arith.constant 0 : i32
    %c0_i32_1 = arith.constant 0 : i32
    %c0_i32_2 = arith.constant 0 : i32
    return %c0_i32, %c0_i32_0, %c0_i32_1 : i32, i32, i32
  }
  func.func @transform_6(%arg0: i32) -> (i32, i32, i32) {
    %c0_i32 = arith.constant 0 : i32
    %c0_i32_0 = arith.constant 0 : i32
    %c0_i32_1 = arith.constant 0 : i32
    %c0_i32_2 = arith.constant 0 : i32
    return %c0_i32, %c0_i32_0, %c0_i32_1 : i32, i32, i32
  }
  func.func @transform_7(%arg0: i32) -> (i32, i32, i32) {
    %c0_i32 = arith.constant 0 : i32
    %c0_i32_0 = arith.constant 0 : i32
    %c0_i32_1 = arith.constant 0 : i32
    %c0_i32_2 = arith.constant 0 : i32
    return %c0_i32, %c0_i32_0, %c0_i32_1 : i32, i32, i32
  }
  func.func @transform_8(%arg0: i32) -> (i32, i32) {
    %c0_i32 = arith.constant 0 : i32
    %c0_i32_0 = arith.constant 0 : i32
    %c0_i32_1 = arith.constant 0 : i32
    return %c0_i32, %c0_i32_0 : i32, i32
  }
  func.func @transform_9(%arg0: i32) -> (i32, i32) {
    %c0_i32 = arith.constant 0 : i32
    %c0_i32_0 = arith.constant 0 : i32
    %c0_i32_1 = arith.constant 0 : i32
    return %c0_i32, %c0_i32_0 : i32, i32
  }
  func.func @transform_10(%arg0: i32) -> (i32, i32) {
    %c0_i32 = arith.constant 0 : i32
    %c0_i32_0 = arith.constant 0 : i32
    %c0_i32_1 = arith.constant 0 : i32
    return %c0_i32, %c0_i32_0 : i32, i32
  }
  func.func @transform_11(%arg0: i32) -> (i32, i32) {
    %c0_i32 = arith.constant 0 : i32
    %c0_i32_0 = arith.constant 0 : i32
    %c0_i32_1 = arith.constant 0 : i32
    return %c0_i32, %c0_i32_0 : i32, i32
  }
  func.func @transform_12(%arg0: i32) -> (i32, i32) {
    %c0_i32 = arith.constant 0 : i32
    %c0_i32_0 = arith.constant 0 : i32
    %c0_i32_1 = arith.constant 0 : i32
    return %c0_i32, %c0_i32_0 : i32, i32
  }
  func.func @transform_13(%arg0: i32) -> (i32, i32) {
    %c0_i32 = arith.constant 0 : i32
    %c0_i32_0 = arith.constant 0 : i32
    return %arg0, %c0_i32 : i32, i32
  }
}

</mosaic_0001>

<bundles_post_ra>
// kernel: transformer_encoder_layer.1
= control target key start
LH: loop header
LB: loop body
LE: loop exit
PB: predicated region body
PF: predicated region fallthrough
CT: control target
= control target key end

     0   :  { %s1289_s0 = inlined_call_operand.vmem [shape: f32[16,32], index: 0, kind: input, shape index: {}]   ;;  %s1290_s1 = inlined_call_operand.vmem [shape: f32[2,8,1], index: 1, kind: input, shape index: {}]   ;;  %s1291_s2 = inlined_call_operand.vmem [shape: f32[2,1,8], index: 2, kind: input, shape index: {}]   ;;  %s1292_s3 = inlined_call_operand.vmem [shape: f32[1,32], index: 3, kind: input, shape index: {}]   ;;  %s1293_s4 = inlined_call_operand.vmem [shape: f32[1,32], index: 4, kind: input, shape index: {}]   ;;  %s1294_s5 = inlined_call_operand.vmem [shape: f32[4,32,24], index: 5, kind: input, shape index: {}]   ;;  %s1295_s6 = inlined_call_operand.vmem [shape: f32[4,1,24], index: 6, kind: input, shape index: {}]   ;;  %s1296_s7 = inlined_call_operand.vmem [shape: f32[4,8,32], index: 7, kind: input, shape index: {}]   ;;  %s1297_s8 = inlined_call_operand.vmem [shape: f32[1,32], index: 8, kind: input, shape index: {}]   ;;  %s1298_s9 = inlined_call_operand.vmem [shape: f32[32,64], index: 9, kind: input, shape index: {}]   ;;  %s1299_s10 = inlined_call_operand.vmem [shape: f32[1,64], index: 10, kind: input, shape index: {}]   ;;  %s1300_s11 = inlined_call_operand.vmem [shape: f32[64,32], index: 11, kind: input, shape index: {}]   ;;  %s1301_s12 = inlined_call_operand.vmem [shape: f32[1,32], index: 12, kind: input, shape index: {}]   ;;  %s1302_s13 = inlined_call_operand.hbm [shape: f32[16,32], index: 13, kind: output, shape index: {}]  }
   0x1   :  { %1304 = sst [smem:[#allocation6_spill]] %s1289_s0 }
   0x2   :  { %1305 = sst [smem:[#allocation7_spill]] %s1290_s1 }
   0x3   :  { %1306 = sst [smem:[#allocation8_spill]] %s1291_s2 }
   0x4   :  { %1307 = sst [smem:[#allocation9_spill]] %s1292_s3 }
   0x5   :  { %1308 = sst [smem:[#allocation10_spill]] %s1293_s4 }
   0x6   :  { %18 = vsyncpa [#allocation4], 0 }
   0x7   :  { %20 = vsyncpa [#allocation4 + $0x1], 0  ;;  %s1088_s25 = smov 0   ;;  %s1090_s26 = smov 0  }
   0x8   :  { %s1092_s27 = smov 0   ;;  %s1094_s28 = smov 0  }
   0x9 LB: > { %s1109_s29 = sadd.s32 4294967295, %s1006_s28   ;;  %s850_s30 = sadd.s32 4294967294, %s1006_s28   ;;  %s1006_s28 = sphi %s1094_s28, %s1322_s28   ;;  %s1002_s27 = sphi %s1092_s27, %s1321_s27   ;;  %s998_s26 = sphi %s1090_s26, %s1320_s26   ;;  %s994_s25 = sphi %s1088_s25, %s1319_s25  }
   0xa   : > { %s1113_s14 = sadd.s32 1, %s1006_s28   ;;  %s321_s15 = sadd.s32 1, %s1002_s27 }
   0xb   : > { %s318_s16 = ssub.s32 %s1006_s28, %s1113_s14  ;;  %p331_p0 = scmp.ne.s32.totalorder %s1002_s27, %s998_s26 }
   0xc   : > { %p319_p1 = scmp.eq.s32.totalorder %s318_s16, 0  ;;  %p332_p2 = scmp.eq.s32.totalorder %s1109_s29, 1 }
   0xd   : > { %p337_p3 = scmp.ne.s32.totalorder %s998_s26, %s994_s25  ;;  %p338_p4 = scmp.eq.s32.totalorder %s850_s30, 1 }
   0xe   : > { %s1124_s17 = scalar_select %p319_p1, %s1002_s27, %s321_s15  }
   0xf   : > { %p1126_p5 = por %p332_p2, %p331_p0  ;;  %p1130_p6 = por %p338_p4, %p337_p3 }
  0x10   : > { %p853_p7 = scmp.ge.s32.totalorder %s1006_s28, 1  ;;  %p406_p8 = scmp.lt.s32.totalorder %s1006_s28, 3 }
  0x12   : > { %p407_p9 = pnand %p853_p7, %p406_p8 }
  0x13   : > { %p456_p10 = scmp.lt.s32.totalorder (!%p407_p9), %s1109_s29, 1  ;;  %s1311_s0 = sld [smem:[#allocation6_spill]] (!%p407_p9) }
  0x14   : > { %410 = sbr.rel (%p407_p9) target bundleno = 1490 (0x5d2), region = 72  ;;  %s1312_s1 = sld [smem:[#allocation7_spill]] (!%p407_p9) }
  0x15   : > { %s1313_s2 = sld [smem:[#allocation8_spill]] (!%p407_p9) }
  0x16   : > { %s1314_s3 = sld [smem:[#allocation9_spill]] (!%p407_p9) }
  0x17   : > { %s1315_s4 = sld [smem:[#allocation10_spill]] (!%p407_p9) }
  0x19   : > { %vm468_vm0 = vcmask 261120   ;;  %v1012_v0 = vmov 0.0   ;;  %s1139_s20 = scalar_select %p456_p10, %s1109_s29, 1  ;;  %v1013_v3 = vmov 32.0   ;;  %v1014_v5 = vmov 0  }
  0x1a   : > { %520 = vst.msk [vmem:[#allocation2] sm:$0xff] %vm468_vm0, %v1012_v0  ;;  %928 = vrcp.f32 %v1013_v3  ;;  %923 = vset.pattern.permute.xlu1 %v1014_v5  ;;  %924 = vset.pattern.permute.xlu0 %v1014_v5  ;;  %v1015_v19 = vmov -1e+18  }
  0x1b   : > { %s855_s21 = sshll.u32 %s1139_s20, 3  ;;  %s466_s23 = scalar_lea.vmem %s1313_s2, %s1139_s20 }
  0x1c   : > { %s459_s24 = scalar_lea.vmem %s1311_s0, %s855_s21  ;;  %s463_s16 = scalar_lea.vmem %s1312_s1, %s855_s21  ;;  %v927_v17 = vld [vmem:[%s466_s23] ss:$0 sm:$0xff] }
  0x1d   : > { %v1145_v1 = vld [vmem:[%s459_s24] sm:$0xff]  ;;  %s1303_s24 = sand.u32 1, %s998_s26   ;;  %s1174_s23 = smov 0  }
  0x1e   : > { %v469_v2 = vsel %vm468_vm0, %v1145_v1, 0.0  ;;  %v508_v4 = vld [vmem:[%s463_s16] sm:$0xff]  ;;  %s1161_s30 = sshll.u32 %s1303_s24, 3 }
  0x1f   : > { %470 = vadd.xlane.f32.xlu0 %v469_v2  ;;  %512 = vperm.xlu1 %923, %v508_v4   ;;  %v925_v30 = vld [vmem:[%s1314_s3] ss:$0 sm:$0xff] }
  0x20   : > { %v929_v6 = vpop.eup %928  ;;  %v926_v32 = vld [vmem:[%s1315_s4] ss:$0 sm:$0xff] }
  0x21   : > { %v473_v7 = vmul.f32 32.0, %v929_v6  ;;  %vm477_vm1 = vweird.f32 %v929_v6 }
  0x23   : > { %v474_v8 = vsub.f32 1.0, %v473_v7 }
  0x25   : > { %v475_v9 = vmul.f32 %v929_v6, %v474_v8 }
  0x27   : > { %v476_v10 = vadd.f32 %v929_v6, %v475_v9 }
  0x29   : > { %v478_v11 = vsel %vm477_vm1, %v929_v6, %v476_v10 }
  0x91   : > { %v513_v18 = vpop.permute.xlu1 %512 }
  0x92   : > { %v471_v12 = vpop.xlane.xlu0 %470  ;;  %vm518_vm2 = vcmp.eq.f32.partialorder %v513_v18, %v927_v17 }
  0x93   : > { %v479_v13 = vmul.f32 %v478_v11, %v471_v12  ;;  %v1163_v20 = vsel %vm518_vm2, 0.0, %v1015_v19 }
  0x95   : > { %v480_v14 = vsub.f32 %v1145_v1, %v479_v13 }
  0x97   : > { %v481_v15 = vmul.f32 %v480_v14, %v480_v14 }
  0x99   : > { %v482_v16 = vsel %vm468_vm0, %v481_v15, 0.0 }
  0x9a   : > { %483 = vadd.xlane.f32.xlu0 %v482_v16 }
 0x10d   : > { %v484_v21 = vpop.xlane.xlu0 %483 }
 0x10e   : > { %v485_v22 = vmul.f32 %v484_v21, %v478_v11 }
 0x110   : > { %v486_v23 = vadd.f32 1e-05, %v485_v22 }
 0x112   : > { %930 = vrsqrt.f32 %v486_v23  ;;  %vm493_vm4 = vweird.f32 %v486_v23 }
 0x118   : > { %v931_v24 = vpop.eup %930 }
 0x119   : > { %v488_v25 = vmul.f32 %v931_v24, %v486_v23  ;;  %vm494_vm3 = vweird.f32 %v931_v24 }
 0x11a   : > { %vm495_vm5 = vmor %vm493_vm4, %vm494_vm3 }
 0x11b   : > { %v489_v26 = vmul.f32 %v931_v24, %v488_v25 }
 0x11d   : > { %v490_v27 = vmul.f32 0.5, %v489_v26 }
 0x11f   : > { %v491_v28 = vsub.f32 1.5, %v490_v27 }
 0x121   : > { %v492_v29 = vmul.f32 %v931_v24, %v491_v28 }
 0x123   : > { %v496_v31 = vsel %vm495_vm5, %v931_v24, %v492_v29 }
 0x124   : > { %v497_v33 = vmul.f32 %v496_v31, %v480_v14 }
 0x126   : > { %v502_v34 = vmul.f32 %v925_v30, %v497_v33 }
 0x128   : > { %v1171_v35 = vadd.f32 %v926_v32, %v502_v34 }
 0x129 LB: >> { %s857_s20 = sshll.u32 %s1010_s23, 5  ;;  %s533_s16 = scalar_lea.vmem %s1295_s6, %s1010_s23  ;;  %vm564_vm6 = vcmask 64512   ;;  %v639_v4 = vld [vmem:[#allocation2] sm:$0xff]  ;;  %s1010_s23 = sphi %s1174_s23, %s526_s23  }
 0x12a   : >> { %s528_s1 = scalar_lea.vmem %s1294_s5, %s857_s20  ;;  %v932_v40 = vld [vmem:[%s533_s16] ss:$0 sm:$0xff]  ;;  %s1016_s24 = smov 120  }
 0x12b   : >> { %v532_v36 = vld [vmem:[%s528_s1 + $0x18] sm:$0xff]  ;;  %v531_v37 = vld [vmem:[%s528_s1 + $0x10] sm:$0xff]  ;;  %v530_v38 = vld [vmem:[%s528_s1 + $0x8] sm:$0xff]  ;;  %s1017_s0 = smov 112  }
 0x12c   : >> { %553 = vmatpush.msra.mxu0 %v532_v36  ;;  %v529_v39 = vld [vmem:[%s528_s1] sm:$0xff]  ;;  %s862_s1 = sshll.u32 %s1010_s23, 3  ;;  %s526_s23 = sadd.s32 1, %s1010_s23  }
 0x12d   : >> { %s641_s16 = scalar_lea.vmem %s1296_s7, %s862_s1  ;;  %p523_p11 = scmp.ge.s32.totalorder %s526_s23, 4  }
 0x12e   : >> { %554 = vmatpush.msra.mxu0 %v531_v37  ;;  %v642_v2 = vld [vmem:[%s641_s16] sm:$0xff]  ;;  %v678_v7 = vld [vmem:[%s1298_s9 + $0x18] sm:$0xff] (%p523_p11)  ;;  %v677_v8 = vld [vmem:[%s1298_s9 + $0x10] sm:$0xff] (%p523_p11)  ;;  %vm719_vm11 = vcmask (%p523_p11), 523264   ;;  %s867_s16 = sshll.u32 (%p523_p11), %s1109_s29, 3  ;;  %s1316_s20 = scalar_lea.vmem (%p523_p11), [#allocation3], %s1161_s30 }
 0x12f   : >> { %661 = vmatpush.msra.mxu3 %v642_v2  ;;  %v676_v9 = vld [vmem:[%s1298_s9 + $0x8] sm:$0xff] (%p523_p11)  ;;  %v937_v11 = vld [vmem:[%s1297_s8] ss:$0 sm:$0xff] (%p523_p11)  ;;  %v714_v12 = vld [vmem:[%s1300_s11 + $0x38] sm:$0xff] (%p523_p11)  ;;  %s757_s15 = sshll.u32 (%p523_p11), %s1316_s20, 4  ;;  %s1317_s22 = smov (%p523_p11), %s1316_s20  ;;  %s758_s15 = int_to_ptr.vmem [resolvable:$true] %s757_s15 }
 0x130   : >> { %555 = vmatpush.msra.mxu0 %v530_v38  ;;  %v713_v13 = vld [vmem:[%s1300_s11 + $0x30] sm:$0xff] (%p523_p11)  ;;  %v675_v14 = vld [vmem:[%s1298_s9] sm:$0xff] (%p523_p11)  ;;  %v712_v16 = vld [vmem:[%s1300_s11 + $0x28] sm:$0xff] (%p523_p11)  ;;  %s1318_s3 = sand.u32 (%p523_p11), 1, %s998_s26  }
 0x131   : > { %v711_v18 = vld [vmem:[%s1300_s11 + $0x20] sm:$0xff] (%p523_p11)  ;;  %v710_v19 = vld [vmem:[%s1300_s11 + $0x18] sm:$0xff] (%p523_p11)  ;;  %s745_s29 = scalar_lea.sflag (%p523_p11), [#allocation4], %s1318_s3 }
 0x132   : >> { %556 = vmatpush.msra.mxu0 %v529_v39  ;;  %v707_v21 = vld [vmem:[%s1300_s11] sm:$0xff] (%p523_p11) }
 0x133   : >> { %858 = vmatmul.msk.f32.vlgmr.msra.gmra.mxu0 %vm468_vm0, %v1171_v35  ;;  %v938_v22 = vld [vmem:[%s1299_s10] ss:$0 sm:$0xff] (%p523_p11) }
 0x134   : > { %698 = vmatpush.msra.mxu0 (%p523_p11), %v678_v7  ;;  %v939_v26 = vld [vmem:[%s1301_s12] ss:$0 sm:$0xff] (%p523_p11) }
 0x136   : > { %699 = vmatpush.msra.mxu0 (%p523_p11), %v677_v8 }
 0x138   : > { %700 = vmatpush.msra.mxu0 (%p523_p11), %v676_v9 }
 0x13a   : > { %701 = vmatpush.msra.mxu0 (%p523_p11), %v675_v14 }
 0x1b0   : >> { %v558_v41 = vpop.f32.mrf.mxu0 }
 0x1b1   : >> { %v559_v42 = vadd.f32 %v932_v40, %v558_v41 }
 0x1b3   : >> { %562 = vrot.lane.b32.xlu0 %v559_v42, %s1016_s24  ;;  %s755_s24 = scalar_lea.hbm (%p523_p11), %s1302_s13, %s867_s16 }
 0x1b4   : > { %s759_s2 = sshll.u32 (%p523_p11), %s755_s24, 4  ;;  %s960_s24 = scalar_lea.hbm (%p523_p11), %s1302_s13, 16  ;;  %s760_s2 = int_to_ptr.hbm [resolvable:$true] %s759_s2 }
 0x1b5   : > { %s954_s4 = sshra.s32 (%p523_p11), %s760_s2, 4  ;;  %s955_s4 = int_to_ptr.hbm [resolvable:$true] %s954_s4 }
 0x1b6   : > { %s956_s23 = scalar_lea.hbm (%p523_p11), %s955_s4, 8  ;;  %p961_p1 = scmp.lt.s32.totalorder (%p523_p11), %s955_s4, %s1302_s13 }
 0x1b7   : > { %p957_p12 = scmp.ne.s32.totalorder (%p523_p11), %s955_s4, %s956_s23  ;;  %p962_p2 = scmp.lt.s32.totalorder (%p523_p11), %s960_s24, %s956_s23 }
 0x1b9   : > { %p958_p13 = pnand (%p523_p11), %p957_p12, %p1126_p5  ;;  %p963_p3 = por (%p523_p11), %p962_p2, %p961_p1 }
 0x1bb   : > { %p959_p0 = pneg (%p523_p11), %p958_p13 }
 0x1bd   : > { %p964_p4 = pnand (%p523_p11), %p963_p3, %p959_p0 }
 0x225   : >> { %v563_v43 = vpop.permute.xlu0 %562 }
 0x226   : >> { %859 = vmatpush.xpose.msk.msra.mxu1 %vm564_vm6, %v563_v43 }
 0x229   : >> { %860 = vmatmul.msk.f32.vlgmr.msra.gmra.mxu1 %vm564_vm6, %v559_v42 }
 0x22a   : > { %731 = vmatpush.msra.mxu1 (%p523_p11), %v714_v12 }
 0x22c   : > { %732 = vmatpush.msra.mxu1 (%p523_p11), %v713_v13 }
 0x22e   : > { %733 = vmatpush.msra.mxu1 (%p523_p11), %v712_v16 }
 0x230   : > { %734 = vmatpush.msra.mxu1 (%p523_p11), %v711_v18 }
 0x232   : > { %735 = vmatpush.msra.mxu1 (%p523_p11), %v710_v19 }
 0x2a6   : >> { %v586_v44 = vpop.f32.mrf.mxu1 }
 0x2a7   : >> { %v587_v45 = vadd.f32 %v586_v44, %v1163_v20  ;;  %v708_v20 = vld [vmem:[%s1300_s11 + $0x8] sm:$0xff] (%p523_p11) }
 0x2a9   : >> { %v589_v46 = vsel %vm564_vm6, %v587_v45, -inf }
 0x2aa   : >> { %590 = vmax.xlane.f32.xlu0 %v589_v46 }
 0x31d   : >> { %v591_v47 = vpop.xlane.xlu0 %590 }
 0x31e   : >> { %v592_v48 = vsub.f32 %v587_v45, %v591_v47 }
 0x320   : >> { %v593_v49 = vmul.f32 1.442695, %v592_v48 }
 0x322   : >> { %933 = vpow2.f32 %v593_v49 }
 0x328   : >> { %v934_v50 = vpop.eup %933 }
 0x329   : >> { %v595_v51 = vsel %vm564_vm6, %v934_v50, 0.0 }
 0x32a   : >> { %596 = vadd.xlane.f32.xlu1 %v595_v51 }
 0x343   : >> { %613 = vrot.lane.b32.xlu1 %v559_v42, %s1017_s0 }
 0x39d   : >> { %v597_v52 = vpop.xlane.xlu1 %596 }
 0x39e   : >> { %935 = vrcp.f32 %v597_v52  ;;  %v609_v58 = vand.u32 2147483648, %v597_v52  ;;  %vm603_vm8 = vweird.f32 %v597_v52  ;;  %v607_v59 = vand.u32 2147483647, %v597_v52 }
 0x3a0   : >> { %v610_v61 = vor.u32 1.1754944e-38, %v609_v58  ;;  %vm608_vm10 = vcmp.eq.f32.partialorder %v607_v59, 8.507059e+37 }
 0x3a4   : >> { %v936_v53 = vpop.eup %935 }
 0x3a5   : >> { %v599_v54 = vmul.f32 %v936_v53, %v597_v52  ;;  %vm604_vm7 = vweird.f32 %v936_v53 }
 0x3a6   : >> { %vm605_vm9 = vmor %vm603_vm8, %vm604_vm7 }
 0x3a7   : >> { %v600_v55 = vsub.f32 1.0, %v599_v54 }
 0x3a9   : >> { %v601_v56 = vmul.f32 %v936_v53, %v600_v55 }
 0x3ab   : >> { %v602_v57 = vadd.f32 %v936_v53, %v601_v56 }
 0x3ad   : >> { %v606_v60 = vsel %vm605_vm9, %v936_v53, %v602_v57 }
 0x3ae   : >> { %v611_v62 = vsel %vm608_vm10, %v610_v61, %v606_v60 }
 0x3af   : >> { %v612_v0 = vmul.f32 %v934_v50, %v611_v62 }
 0x3b5   : >> { %v614_v63 = vpop.permute.xlu1 %613 }
 0x3b6   : >> { %634 = vmatpush.msra.mxu2 %v614_v63 }
 0x3b7   : >> { %861 = vmatmul.msk.f32.vlgmr.msra.gmra.mxu2 %vm564_vm6, %v612_v0 }
 0x43a   : >> { %v636_v3 = vpop.f32.mrf.mxu2 }
 0x43b   : >> { %863 = vmatmul.msk.f32.vlgmr.msra.gmra.mxu3 %vm564_vm6, %v636_v3 }
 0x4bd   : > { %525 = sbr.rel (!%p523_p11) target bundleno = 297 (0x129), region = 123 }
 0x4be   : >> { %v663_v5 = vpop.f32.mrf.mxu3 }
 0x4bf   : >> { %v666_v6 = vadd.f32 %v663_v5, %v639_v4 }
 0x4c1   : >> { %667 = vst.msk [vmem:[#allocation2] sm:$0xff] %vm468_vm0, %v666_v6 }
 0x4c8   : > { %v668_v10 = vld [vmem:[#allocation2] sm:$0xff] }
 0x4c9   : > { %v673_v15 = vadd.f32 %v937_v11, %v668_v10 }
 0x4cb   : > { %v674_v17 = vadd.f32 %v673_v15, %v1145_v1  ;;  %v709_v1 = vld [vmem:[%s1300_s11 + $0x10] sm:$0xff] }
 0x4cc   : > { %736 = vmatpush.msra.mxu1 %v709_v1 }
 0x4cd   : > { %864 = vmatmul.msk.f32.vlgmr.msra.gmra.mxu0 %vm468_vm0, %v674_v17 }
 0x4ce   : > { %737 = vmatpush.msra.mxu1 %v708_v20 }
 0x4d0   : > { %738 = vmatpush.msra.mxu1 %v707_v21 }
 0x54a   : > { %v703_v23 = vpop.f32.mrf.mxu0 }
 0x54b   : > { %v704_v24 = vadd.f32 %v938_v22, %v703_v23 }
 0x54d   : > { %v706_v25 = vmax.f32 %v704_v24, 0.0 }
 0x54f   : > { %865 = vmatmul.msk.f32.vlgmr.msra.gmra.mxu1 %vm719_vm11, %v706_v25 }
 0x5cc   : > { %v740_v27 = vpop.f32.mrf.mxu1 }
 0x5cd   : > { %v741_v28 = vadd.f32 %v939_v26, %v740_v27 }
 0x5cf   : > { %743 = vst.msk [vmem:[%s1317_s22] sm:$0xff] %vm468_vm0, %v741_v28 }
 0x5d0   : > { %967 = shalt.err (!%p964_p4)
}
 0x5d1   : > { %870 = dma.vmem_to_hbm [thread:$0]  (%p1126_p5), %s758_s15, 128, %s760_s2, %s745_s29  }
 0x5d2 PF: > { %p876_p7 = scmp.ge.s32.totalorder %s1006_s28, 2  ;;  %s771_s3 = sand.u32 1, %s994_s25  }
 0x5d3   : > { %s772_s30 = scalar_lea.sflag [#allocation4], %s771_s3 }
 0x5d4   : > { %p873_p8 = pnand %p876_p7, %p1130_p6 }
 0x5d6   : > { %p874_p9 = pneg %p873_p8 }
 0x5d8   : > { %989 = dma.done.wait (%p874_p9), %s772_s30, 128  }
 0x5d9   : > { %991 = vsyncadd (%p874_p9), %s772_s30, 4294967168  ;;  %p23_p10 = scmp.ge.s32.totalorder %s1113_s14, 4   ;;  %s1319_s25 = smov %s998_s26 }
 0x5da   : > { %s1320_s26 = smov %s1002_s27  ;;  %s1321_s27 = smov %s1124_s17 }
 0x5db   : > { %s1322_s28 = smov %s1113_s14  ;;  %25 = sbr.rel (!%p23_p10) target bundleno = 9 (0x9), region = 134 }
 0x5e0   :  { %778 = vsyncpa [#allocation4], 1 }
 0x5e1   :  { %780 = vsyncpa [#allocation4 + $0x1], 1 }

</bundles_post_ra>
